<compile_context>
chip_gen: v5e
topology: v5e:2x2
jax: 0.10.0
libtpu: 0.0.40
codegen_flags: <defaults>
</compile_context>

<pallas_src>
import functools

import jax
import jax.numpy as jnp
from jax import lax
from jax.experimental import pallas as pl
from jax.experimental.pallas import tpu as pltpu


def _repconv_fold_kernel(x_ref, a_ref, m_ref, b_ref, out_ref, *, width):
    # x_ref:   (1, C, HW)  one image; channels on sublanes, pixels on lanes (lane-dense)
    # a_ref:   (9, C, C)   folded 3x3 tap weights (out_ch, in_ch); identity folded in
    # m_ref:   (9, 1, HW)  {0,1} tap-validity masks (zero padding of the conv)
    # b_ref:   (C, HW)     per-pixel folded bias map (b1/b2/b3 incl. border handling)
    # out_ref: (1, C, HW)
    _, _, hw = x_ref.shape
    x = x_ref[0]                                   # (C, HW), already f32
    acc = b_ref[...]                               # start from the folded bias map
    for t in range(9):
        dy, dx = t // 3 - 1, t % 3 - 1
        off = dy * width + dx                      # flat pixel offset of this tap
        if off == 0:
            xs = x                                 # centre tap: no shift, always valid
        else:
            # want xs[p] = x[p + off] (out-of-bounds -> 0): roll by -off, then mask
            xs = pltpu.roll(x, (-off) % hw, axis=1) * m_ref[t]
        acc = acc + jnp.dot(a_ref[t], xs, preferred_element_type=jnp.float32)
    out_ref[0] = acc.astype(out_ref.dtype)


def _fold_repconv_params(params, h, w):
    """RepVGG-style reparameterisation of conv1x1 -> conv3x3(pad=1) -> conv1x1 (+ I)."""
    w1_t, b1, w2_t, b2, w3_t, b3 = params
    c = w1_t.shape[1]
    hw = h * w
    mm = functools.partial(jnp.matmul, precision=lax.Precision.HIGHEST)

    w1m = w1_t[:, :, 0, 0]                         # (2C, C)
    w3m = w3_t[:, :, 0, 0]                         # (C, 2C)

    ii = jnp.arange(h)[:, None]
    jj = jnp.arange(w)[None, :]

    taps, tap_biases, masks = [], [], []
    for ky in range(3):
        for kx in range(3):
            dy, dx = ky - 1, kx - 1
            w2m = w2_t[:, :, ky, kx]               # (2C, 2C)
            a = mm(w3m, mm(w2m, w1m))              # (C, C) effective tap weight
            if dy == 0 and dx == 0:
                a = a + jnp.eye(c, dtype=a.dtype)  # fold the residual into the centre
            taps.append(a)
            tap_biases.append(mm(w3m, mm(w2m, b1[:, None]))[:, 0])     # (C,)
            valid = ((ii + dy >= 0) & (ii + dy < h) &
                     (jj + dx >= 0) & (jj + dx < w))
            masks.append(valid.reshape(1, hw).astype(jnp.float32))     # (1, HW)

    a_all = jnp.stack(taps, axis=0)                                    # (9, C, C)
    m_all = jnp.stack(masks, axis=0)                                   # (9, 1, HW)
    b_const = mm(w3m, b2[:, None])[:, 0] + b3                          # (C,)
    bias_map = b_const[:, None] + sum(
        tb[:, None] * m for tb, m in zip(tap_biases, masks))           # (C, HW)
    return a_all, m_all, bias_map


def repconv_pallas(x_nchw, params):
    """One RepConv block: conv1x1 -> conv3x3(pad=1) -> conv1x1, plus residual."""
    n, c, h, w = x_nchw.shape
    hw = h * w
    a_all, m_all, bias_map = _fold_repconv_params(params, h, w)

    x = x_nchw.reshape(n, c, hw)                   # free reshape, no transpose

    kernel = functools.partial(_repconv_fold_kernel, width=w)
    out = pl.pallas_call(
        kernel,
        out_shape=jax.ShapeDtypeStruct((n, c, hw), jnp.float32),
        grid=(n,),
        in_specs=[
            pl.BlockSpec((1, c, hw), lambda i: (i, 0, 0)),
            pl.BlockSpec((9, c, c), lambda i: (0, 0, 0)),
            pl.BlockSpec((9, 1, hw), lambda i: (0, 0, 0)),
            pl.BlockSpec((c, hw), lambda i: (0, 0)),
        ],
        out_specs=pl.BlockSpec((1, c, hw), lambda i: (i, 0, 0)),
        compiler_params=pltpu.CompilerParams(
            dimension_semantics=("parallel",)),
    )(x, a_all, m_all, bias_map)

    return out.reshape(n, c, h, w)


def mfdb_partial_pallas(x, repconv_params_list):
    """MFDB forward: k RepConv blocks + outer residual."""
    # TODO(synk): MFA stage (haar_trans + 3x conv3x3 + LeakyReLU/Hardtanh + bilinear x2 upsample + gating) omitted -- haar_trans is undefined in the provided spec.
    y = x
    for p in repconv_params_list:
        y = repconv_pallas(y, p)
    return y + x


# ---------------- pure-JAX references (match the PyTorch module) ----------------

def repconv_reference(x, params):
    w1_t, b1, w2_t, b2, w3_t, b3 = params
    dn = ('NCHW', 'OIHW', 'NCHW')
    p = lax.Precision.HIGHEST
    y = lax.conv_general_dilated(x, w1_t, (1, 1), 'VALID',
                                 dimension_numbers=dn, precision=p)
    y = y + b1[None, :, None, None]
    y = lax.conv_general_dilated(y, w2_t, (1, 1), ((1, 1), (1, 1)),
                                 dimension_numbers=dn, precision=p)
    y = y + b2[None, :, None, None]
    y = lax.conv_general_dilated(y, w3_t, (1, 1), 'VALID',
                                 dimension_numbers=dn, precision=p)
    y = y + b3[None, :, None, None]
    return y + x


def mfdb_partial_reference(x, repconv_params_list):
    y = x
    for p in repconv_params_list:
        y = repconv_reference(y, p)
    return y + x


def make_params(key, c):
    """Deterministic synthetic parameters with nn.Conv2d shapes."""
    ks = jax.random.split(key, 6)
    w1 = 0.1 * jax.random.normal(ks[0], (2 * c, c, 1, 1), jnp.float32)
    b1 = 0.1 * jax.random.normal(ks[1], (2 * c,), jnp.float32)
    w2 = 0.1 * jax.random.normal(ks[2], (2 * c, 2 * c, 3, 3), jnp.float32)
    b2 = 0.1 * jax.random.normal(ks[3], (2 * c,), jnp.float32)
    w3 = 0.1 * jax.random.normal(ks[4], (c, 2 * c, 1, 1), jnp.float32)
    b3 = 0.1 * jax.random.normal(ks[5], (c,), jnp.float32)
    return (w1, b1, w2, b2, w3, b3)


if __name__ == "__main__":
    key = jax.random.PRNGKey(0)
    kx, kp1, kp2 = jax.random.split(key, 3)

    N, C, H, W = 2, 4, 16, 16
    x = jax.random.normal(kx, (N, C, H, W), jnp.float32)

    # Single RepConv block vs. conv reference.
    params = make_params(kp1, C)
    out = jax.block_until_ready(repconv_pallas(x, params))
    ref = jax.block_until_ready(repconv_reference(x, params))
    assert out.shape == (N, C, H, W)
    err = jnp.max(jnp.abs(out - ref))
    assert jnp.allclose(out, ref, rtol=1e-4, atol=1e-4), f"repconv max abs err {err}"

    # k=2 stacked RepConv blocks + MFDB outer residual (MFA stage: see TODO above).
    plist = [params, make_params(kp2, C)]
    out2 = jax.block_until_ready(mfdb_partial_pallas(x, plist))
    ref2 = jax.block_until_ready(mfdb_partial_reference(x, plist))
    err2 = jnp.max(jnp.abs(out2 - ref2))
    assert jnp.allclose(out2, ref2, rtol=1e-4, atol=2e-4), f"mfdb max abs err {err2}"

    print("KERNEL_OK")
</pallas_src>

<mosaic_0001>
module attributes {stable_mosaic.version = 11 : i64} {
  func.func @_repconv_fold_kernel(%arg0: i32, %arg1: memref<1x4x256xf32, #tpu.memory_space<vmem>>, %arg2: memref<9x4x4xf32, #tpu.memory_space<vmem>>, %arg3: memref<9x1x256xf32, #tpu.memory_space<vmem>>, %arg4: memref<4x256xf32, #tpu.memory_space<vmem>>, %arg5: memref<1x4x256xf32, #tpu.memory_space<vmem>>) attributes {dimension_semantics = [#tpu.dimension_semantics<parallel>], iteration_bounds = array<i64: 2>, scalar_prefetch = 0 : i64, scratch_operands = 0 : i64, tpu.core_type = #tpu.core_type<tc>, window_params = [{transform_indices = @transform_0, window_bounds = array<i64: 1, 4, 256>}, {pipeline_mode = #tpu.pipeline_mode<synchronous>, transform_indices = @transform_1, window_bounds = array<i64: 9, 4, 4>}, {pipeline_mode = #tpu.pipeline_mode<synchronous>, transform_indices = @transform_2, window_bounds = array<i64: 9, 1, 256>}, {pipeline_mode = #tpu.pipeline_mode<synchronous>, transform_indices = @transform_3, window_bounds = array<i64: 4, 256>}, {transform_indices = @transform_4, window_bounds = array<i64: 1, 4, 256>}]} {
    %c0 = arith.constant 0 : index
    %c0_0 = arith.constant 0 : index
    %c0_1 = arith.constant 0 : index
    %0 = vector.load %arg1[%c0, %c0_0, %c0_1] : memref<1x4x256xf32, #tpu.memory_space<vmem>>, vector<1x4x256xf32>
    %1 = vector.shape_cast %0 : vector<1x4x256xf32> to vector<4x256xf32>
    %c0_2 = arith.constant 0 : index
    %c0_3 = arith.constant 0 : index
    %2 = vector.load %arg4[%c0_2, %c0_3] : memref<4x256xf32, #tpu.memory_space<vmem>>, vector<4x256xf32>
    %c17_i32 = arith.constant 17 : i32
    %3 = tpu.dynamic_rotate %1 by %c17_i32 dim 1 : vector<4x256xf32>, i32 -> vector<4x256xf32>
    %c0_4 = arith.constant 0 : index
    %c0_5 = arith.constant 0 : index
    %c0_6 = arith.constant 0 : index
    %4 = vector.load %arg3[%c0_4, %c0_5, %c0_6] : memref<9x1x256xf32, #tpu.memory_space<vmem>>, vector<1x1x256xf32>
    %5 = vector.shape_cast %4 : vector<1x1x256xf32> to vector<1x256xf32>
    %6 = vector.broadcast %5 : vector<1x256xf32> to vector<4x256xf32>
    %7 = arith.mulf %3, %6 : vector<4x256xf32>
    %c0_7 = arith.constant 0 : index
    %c0_8 = arith.constant 0 : index
    %c0_9 = arith.constant 0 : index
    %8 = vector.load %arg2[%c0_7, %c0_8, %c0_9] : memref<9x4x4xf32, #tpu.memory_space<vmem>>, vector<1x4x4xf32>
    %9 = vector.shape_cast %8 : vector<1x4x4xf32> to vector<4x4xf32>
    %cst = arith.constant dense<0.000000e+00> : vector<4x256xf32>
    %10 = tpu.matmul %9, %7, %cst {dimension_numbers = #tpu.dot_dimension_numbers<[1], [0], [0], [1], [0, 0, 1, 1], [], []>} : vector<4x4xf32>, vector<4x256xf32>, vector<4x256xf32> -> vector<4x256xf32>
    %11 = arith.addf %2, %10 : vector<4x256xf32>
    %c16_i32 = arith.constant 16 : i32
    %12 = tpu.dynamic_rotate %1 by %c16_i32 dim 1 : vector<4x256xf32>, i32 -> vector<4x256xf32>
    %c1 = arith.constant 1 : index
    %c0_10 = arith.constant 0 : index
    %c0_11 = arith.constant 0 : index
    %13 = vector.load %arg3[%c1, %c0_10, %c0_11] : memref<9x1x256xf32, #tpu.memory_space<vmem>>, vector<1x1x256xf32>
    %14 = vector.shape_cast %13 : vector<1x1x256xf32> to vector<1x256xf32>
    %15 = vector.broadcast %14 : vector<1x256xf32> to vector<4x256xf32>
    %16 = arith.mulf %12, %15 : vector<4x256xf32>
    %c1_12 = arith.constant 1 : index
    %c0_13 = arith.constant 0 : index
    %c0_14 = arith.constant 0 : index
    %17 = vector.load %arg2[%c1_12, %c0_13, %c0_14] : memref<9x4x4xf32, #tpu.memory_space<vmem>>, vector<1x4x4xf32>
    %18 = vector.shape_cast %17 : vector<1x4x4xf32> to vector<4x4xf32>
    %cst_15 = arith.constant dense<0.000000e+00> : vector<4x256xf32>
    %19 = tpu.matmul %18, %16, %cst_15 {dimension_numbers = #tpu.dot_dimension_numbers<[1], [0], [0], [1], [0, 0, 1, 1], [], []>} : vector<4x4xf32>, vector<4x256xf32>, vector<4x256xf32> -> vector<4x256xf32>
    %20 = arith.addf %11, %19 : vector<4x256xf32>
    %c15_i32 = arith.constant 15 : i32
    %21 = tpu.dynamic_rotate %1 by %c15_i32 dim 1 : vector<4x256xf32>, i32 -> vector<4x256xf32>
    %c2 = arith.constant 2 : index
    %c0_16 = arith.constant 0 : index
    %c0_17 = arith.constant 0 : index
    %22 = vector.load %arg3[%c2, %c0_16, %c0_17] : memref<9x1x256xf32, #tpu.memory_space<vmem>>, vector<1x1x256xf32>
    %23 = vector.shape_cast %22 : vector<1x1x256xf32> to vector<1x256xf32>
    %24 = vector.broadcast %23 : vector<1x256xf32> to vector<4x256xf32>
    %25 = arith.mulf %21, %24 : vector<4x256xf32>
    %c2_18 = arith.constant 2 : index
    %c0_19 = arith.constant 0 : index
    %c0_20 = arith.constant 0 : index
    %26 = vector.load %arg2[%c2_18, %c0_19, %c0_20] : memref<9x4x4xf32, #tpu.memory_space<vmem>>, vector<1x4x4xf32>
    %27 = vector.shape_cast %26 : vector<1x4x4xf32> to vector<4x4xf32>
    %cst_21 = arith.constant dense<0.000000e+00> : vector<4x256xf32>
    %28 = tpu.matmul %27, %25, %cst_21 {dimension_numbers = #tpu.dot_dimension_numbers<[1], [0], [0], [1], [0, 0, 1, 1], [], []>} : vector<4x4xf32>, vector<4x256xf32>, vector<4x256xf32> -> vector<4x256xf32>
    %29 = arith.addf %20, %28 : vector<4x256xf32>
    %c1_i32 = arith.constant 1 : i32
    %30 = tpu.dynamic_rotate %1 by %c1_i32 dim 1 : vector<4x256xf32>, i32 -> vector<4x256xf32>
    %c3 = arith.constant 3 : index
    %c0_22 = arith.constant 0 : index
    %c0_23 = arith.constant 0 : index
    %31 = vector.load %arg3[%c3, %c0_22, %c0_23] : memref<9x1x256xf32, #tpu.memory_space<vmem>>, vector<1x1x256xf32>
    %32 = vector.shape_cast %31 : vector<1x1x256xf32> to vector<1x256xf32>
    %33 = vector.broadcast %32 : vector<1x256xf32> to vector<4x256xf32>
    %34 = arith.mulf %30, %33 : vector<4x256xf32>
    %c3_24 = arith.constant 3 : index
    %c0_25 = arith.constant 0 : index
    %c0_26 = arith.constant 0 : index
    %35 = vector.load %arg2[%c3_24, %c0_25, %c0_26] : memref<9x4x4xf32, #tpu.memory_space<vmem>>, vector<1x4x4xf32>
    %36 = vector.shape_cast %35 : vector<1x4x4xf32> to vector<4x4xf32>
    %cst_27 = arith.constant dense<0.000000e+00> : vector<4x256xf32>
    %37 = tpu.matmul %36, %34, %cst_27 {dimension_numbers = #tpu.dot_dimension_numbers<[1], [0], [0], [1], [0, 0, 1, 1], [], []>} : vector<4x4xf32>, vector<4x256xf32>, vector<4x256xf32> -> vector<4x256xf32>
    %38 = arith.addf %29, %37 : vector<4x256xf32>
    %c4 = arith.constant 4 : index
    %c0_28 = arith.constant 0 : index
    %c0_29 = arith.constant 0 : index
    %39 = vector.load %arg2[%c4, %c0_28, %c0_29] : memref<9x4x4xf32, #tpu.memory_space<vmem>>, vector<1x4x4xf32>
    %40 = vector.shape_cast %39 : vector<1x4x4xf32> to vector<4x4xf32>
    %cst_30 = arith.constant dense<0.000000e+00> : vector<4x256xf32>
    %41 = tpu.matmul %40, %1, %cst_30 {dimension_numbers = #tpu.dot_dimension_numbers<[1], [0], [0], [1], [0, 0, 1, 1], [], []>} : vector<4x4xf32>, vector<4x256xf32>, vector<4x256xf32> -> vector<4x256xf32>
    %42 = arith.addf %38, %41 : vector<4x256xf32>
    %c255_i32 = arith.constant 255 : i32
    %43 = tpu.dynamic_rotate %1 by %c255_i32 dim 1 : vector<4x256xf32>, i32 -> vector<4x256xf32>
    %c5 = arith.constant 5 : index
    %c0_31 = arith.constant 0 : index
    %c0_32 = arith.constant 0 : index
    %44 = vector.load %arg3[%c5, %c0_31, %c0_32] : memref<9x1x256xf32, #tpu.memory_space<vmem>>, vector<1x1x256xf32>
    %45 = vector.shape_cast %44 : vector<1x1x256xf32> to vector<1x256xf32>
    %46 = vector.broadcast %45 : vector<1x256xf32> to vector<4x256xf32>
    %47 = arith.mulf %43, %46 : vector<4x256xf32>
    %c5_33 = arith.constant 5 : index
    %c0_34 = arith.constant 0 : index
    %c0_35 = arith.constant 0 : index
    %48 = vector.load %arg2[%c5_33, %c0_34, %c0_35] : memref<9x4x4xf32, #tpu.memory_space<vmem>>, vector<1x4x4xf32>
    %49 = vector.shape_cast %48 : vector<1x4x4xf32> to vector<4x4xf32>
    %cst_36 = arith.constant dense<0.000000e+00> : vector<4x256xf32>
    %50 = tpu.matmul %49, %47, %cst_36 {dimension_numbers = #tpu.dot_dimension_numbers<[1], [0], [0], [1], [0, 0, 1, 1], [], []>} : vector<4x4xf32>, vector<4x256xf32>, vector<4x256xf32> -> vector<4x256xf32>
    %51 = arith.addf %42, %50 : vector<4x256xf32>
    %c241_i32 = arith.constant 241 : i32
    %52 = tpu.dynamic_rotate %1 by %c241_i32 dim 1 : vector<4x256xf32>, i32 -> vector<4x256xf32>
    %c6 = arith.constant 6 : index
    %c0_37 = arith.constant 0 : index
    %c0_38 = arith.constant 0 : index
    %53 = vector.load %arg3[%c6, %c0_37, %c0_38] : memref<9x1x256xf32, #tpu.memory_space<vmem>>, vector<1x1x256xf32>
    %54 = vector.shape_cast %53 : vector<1x1x256xf32> to vector<1x256xf32>
    %55 = vector.broadcast %54 : vector<1x256xf32> to vector<4x256xf32>
    %56 = arith.mulf %52, %55 : vector<4x256xf32>
    %c6_39 = arith.constant 6 : index
    %c0_40 = arith.constant 0 : index
    %c0_41 = arith.constant 0 : index
    %57 = vector.load %arg2[%c6_39, %c0_40, %c0_41] : memref<9x4x4xf32, #tpu.memory_space<vmem>>, vector<1x4x4xf32>
    %58 = vector.shape_cast %57 : vector<1x4x4xf32> to vector<4x4xf32>
    %cst_42 = arith.constant dense<0.000000e+00> : vector<4x256xf32>
    %59 = tpu.matmul %58, %56, %cst_42 {dimension_numbers = #tpu.dot_dimension_numbers<[1], [0], [0], [1], [0, 0, 1, 1], [], []>} : vector<4x4xf32>, vector<4x256xf32>, vector<4x256xf32> -> vector<4x256xf32>
    %60 = arith.addf %51, %59 : vector<4x256xf32>
    %c240_i32 = arith.constant 240 : i32
    %61 = tpu.dynamic_rotate %1 by %c240_i32 dim 1 : vector<4x256xf32>, i32 -> vector<4x256xf32>
    %c7 = arith.constant 7 : index
    %c0_43 = arith.constant 0 : index
    %c0_44 = arith.constant 0 : index
    %62 = vector.load %arg3[%c7, %c0_43, %c0_44] : memref<9x1x256xf32, #tpu.memory_space<vmem>>, vector<1x1x256xf32>
    %63 = vector.shape_cast %62 : vector<1x1x256xf32> to vector<1x256xf32>
    %64 = vector.broadcast %63 : vector<1x256xf32> to vector<4x256xf32>
    %65 = arith.mulf %61, %64 : vector<4x256xf32>
    %c7_45 = arith.constant 7 : index
    %c0_46 = arith.constant 0 : index
    %c0_47 = arith.constant 0 : index
    %66 = vector.load %arg2[%c7_45, %c0_46, %c0_47] : memref<9x4x4xf32, #tpu.memory_space<vmem>>, vector<1x4x4xf32>
    %67 = vector.shape_cast %66 : vector<1x4x4xf32> to vector<4x4xf32>
    %cst_48 = arith.constant dense<0.000000e+00> : vector<4x256xf32>
    %68 = tpu.matmul %67, %65, %cst_48 {dimension_numbers = #tpu.dot_dimension_numbers<[1], [0], [0], [1], [0, 0, 1, 1], [], []>} : vector<4x4xf32>, vector<4x256xf32>, vector<4x256xf32> -> vector<4x256xf32>
    %69 = arith.addf %60, %68 : vector<4x256xf32>
    %c239_i32 = arith.constant 239 : i32
    %70 = tpu.dynamic_rotate %1 by %c239_i32 dim 1 : vector<4x256xf32>, i32 -> vector<4x256xf32>
    %c8 = arith.constant 8 : index
    %c0_49 = arith.constant 0 : index
    %c0_50 = arith.constant 0 : index
    %71 = vector.load %arg3[%c8, %c0_49, %c0_50] : memref<9x1x256xf32, #tpu.memory_space<vmem>>, vector<1x1x256xf32>
    %72 = vector.shape_cast %71 : vector<1x1x256xf32> to vector<1x256xf32>
    %73 = vector.broadcast %72 : vector<1x256xf32> to vector<4x256xf32>
    %74 = arith.mulf %70, %73 : vector<4x256xf32>
    %c8_51 = arith.constant 8 : index
    %c0_52 = arith.constant 0 : index
    %c0_53 = arith.constant 0 : index
    %75 = vector.load %arg2[%c8_51, %c0_52, %c0_53] : memref<9x4x4xf32, #tpu.memory_space<vmem>>, vector<1x4x4xf32>
    %76 = vector.shape_cast %75 : vector<1x4x4xf32> to vector<4x4xf32>
    %cst_54 = arith.constant dense<0.000000e+00> : vector<4x256xf32>
    %77 = tpu.matmul %76, %74, %cst_54 {dimension_numbers = #tpu.dot_dimension_numbers<[1], [0], [0], [1], [0, 0, 1, 1], [], []>} : vector<4x4xf32>, vector<4x256xf32>, vector<4x256xf32> -> vector<4x256xf32>
    %78 = arith.addf %69, %77 : vector<4x256xf32>
    %c0_55 = arith.constant 0 : index
    %c0_56 = arith.constant 0 : index
    %c0_57 = arith.constant 0 : index
    %79 = vector.load %arg5[%c0_55, %c0_56, %c0_57] : memref<1x4x256xf32, #tpu.memory_space<vmem>>, vector<1x4x256xf32>
    %80 = vector.shape_cast %79 : vector<1x4x256xf32> to vector<4x256xf32>
    %81 = vector.shape_cast %78 : vector<4x256xf32> to vector<1x4x256xf32>
    tpu.vector_store %arg5[%c0_55, %c0_56, %c0_57], %81 {strides = array<i32>} : memref<1x4x256xf32, #tpu.memory_space<vmem>>, vector<1x4x256xf32>,
    return
  }
  func.func @transform_0(%arg0: i32) -> (i32, i32, i32) {
    %c0_i32 = arith.constant 0 : i32
    %c0_i32_0 = arith.constant 0 : i32
    %c0_i32_1 = arith.constant 0 : i32
    return %arg0, %c0_i32, %c0_i32_0 : i32, i32, i32
  }
  func.func @transform_1(%arg0: i32) -> (i32, i32, i32) {
    %c0_i32 = arith.constant 0 : i32
    %c0_i32_0 = arith.constant 0 : i32
    %c0_i32_1 = arith.constant 0 : i32
    %c0_i32_2 = arith.constant 0 : i32
    return %c0_i32, %c0_i32_0, %c0_i32_1 : i32, i32, i32
  }
  func.func @transform_2(%arg0: i32) -> (i32, i32, i32) {
    %c0_i32 = arith.constant 0 : i32
    %c0_i32_0 = arith.constant 0 : i32
    %c0_i32_1 = arith.constant 0 : i32
    %c0_i32_2 = arith.constant 0 : i32
    return %c0_i32, %c0_i32_0, %c0_i32_1 : i32, i32, i32
  }
  func.func @transform_3(%arg0: i32) -> (i32, i32) {
    %c0_i32 = arith.constant 0 : i32
    %c0_i32_0 = arith.constant 0 : i32
    %c0_i32_1 = arith.constant 0 : i32
    return %c0_i32, %c0_i32_0 : i32, i32
  }
  func.func @transform_4(%arg0: i32) -> (i32, i32, i32) {
    %c0_i32 = arith.constant 0 : i32
    %c0_i32_0 = arith.constant 0 : i32
    %c0_i32_1 = arith.constant 0 : i32
    return %arg0, %c0_i32, %c0_i32_0 : i32, i32, i32
  }
}

</mosaic_0001>

<bundles_post_ra>
// kernel: tpu_custom_call.1
= control target key start
LH: loop header
LB: loop body
LE: loop exit
PB: predicated region body
PF: predicated region fallthrough
CT: control target
= control target key end

     0   :  { %9 = vsyncpa [#allocation3], 0  ;;  %s1366_s0 = inlined_call_operand.vmem [shape: f32[2,4,256], index: 0, kind: input, shape index: {}]   ;;  %s1367_s1 = inlined_call_operand.vmem [shape: f32[9,4,4], index: 1, kind: input, shape index: {}]   ;;  %s1368_s2 = inlined_call_operand.vmem [shape: f32[9,1,256], index: 2, kind: input, shape index: {}]   ;;  %s1369_s3 = inlined_call_operand.vmem [shape: f32[4,256], index: 3, kind: input, shape index: {}]   ;;  %s1370_s4 = inlined_call_operand.hbm [shape: f32[2,4,256], index: 4, kind: output, shape index: {}]  }
   0x1   :  { %11 = vsyncpa [#allocation3 + $0x1], 0  ;;  %s1169_s15 = smov 0   ;;  %s1171_s16 = smov 0  }
   0x2   :  { %s1173_s17 = smov 0   ;;  %s1175_s18 = smov 0  }
   0x3 LB: > { %s1190_s19 = sadd.s32 4294967295, %s1134_s18   ;;  %s960_s20 = sadd.s32 4294967294, %s1134_s18   ;;  %s1134_s18 = sphi %s1175_s18, %s1376_s18   ;;  %s1130_s17 = sphi %s1173_s17, %s1375_s17   ;;  %s1126_s16 = sphi %s1171_s16, %s1374_s16   ;;  %s1122_s15 = sphi %s1169_s15, %s1373_s15  }
   0x4   : > { %s1194_s21 = sadd.s32 1, %s1134_s18   ;;  %s113_s22 = sadd.s32 1, %s1130_s17 }
   0x5   : > { %s110_s23 = ssub.s32 %s1134_s18, %s1194_s21  ;;  %p123_p0 = scmp.ne.s32.totalorder %s1130_s17, %s1126_s16 }
   0x6   : > { %p111_p1 = scmp.eq.s32.totalorder %s110_s23, 0  ;;  %p124_p2 = scmp.eq.s32.totalorder %s1190_s19, 1 }
   0x7   : > { %p129_p3 = scmp.ne.s32.totalorder %s1126_s16, %s1122_s15  ;;  %p130_p4 = scmp.eq.s32.totalorder %s960_s20, 1 }
   0x8   : > { %s1205_s24 = scalar_select %p111_p1, %s1130_s17, %s113_s22  }
   0x9   : > { %p1207_p5 = por %p124_p2, %p123_p0  ;;  %p1211_p6 = por %p130_p4, %p129_p3 }
   0xa   : > { %p963_p7 = scmp.ge.s32.totalorder %s1134_s18, 1  ;;  %p165_p8 = scmp.lt.s32.totalorder %s1134_s18, 3 }
   0xc   : > { %p166_p9 = pnand %p963_p7, %p165_p8 }
   0xd   : > { %p191_p10 = scmp.lt.s32.totalorder (!%p166_p9), %s1190_s19, 1  ;;  %s1136_s6 = smov (!%p166_p9), 17  }
   0xe   : > { %169 = sbr.rel (%p166_p9) target bundleno = 349 (0x15d), region = 36  ;;  %s1137_s7 = smov (!%p166_p9), 16  }
   0xf   : > { %s1138_s8 = smov (!%p166_p9), 15   ;;  %s1139_s9 = smov (!%p166_p9), 1  }
  0x10   : > { %s1140_s10 = smov (!%p166_p9), 127   ;;  %s1141_s11 = smov (!%p166_p9), 113  }
  0x11   : > { %s1142_s12 = smov (!%p166_p9), 112   ;;  %s1143_s13 = smov (!%p166_p9), 111  }
  0x12   : > { %s188_s22 = sand.u32 (!%p166_p9), 1, %s1126_s16  }
  0x13   : > { %s192_s27 = scalar_select %p191_p10, %s1190_s19, 1  ;;  %v208_v20 = vlaneseq  ;;  %v213_v23 = vld [vmem:[%s1368_s2] sm:$0x3]  ;;  %v977_v24 = vld [vmem:[%s1368_s2 + $0x4] sm:$0x3]  ;;  %vm226_vm2 = vcmask 1043456  }
  0x14   : > { %v215_v26 = vperm.slane %v213_v23, 0  ;;  %v216_v27 = vperm.slane %v213_v23, 1  ;;  %v372_v28 = vperm.slane %v977_v24, 0  ;;  %v373_v29 = vperm.slane %v977_v24, 1  ;;  %v221_v38 = vld [vmem:[%s1367_s1] sm:$0xf] }
  0x15   : > { %s1023_s28 = sshll.u32 %s192_s27, 3  ;;  %v1224_v22 = vand.u32 127, %v208_v20  ;;  %vm222_vm3 = vcmask 31744   ;;  %v971_v41 = vld [vmem:[%s1368_s2 + $0x2] sm:$0x3]  ;;  %s964_s23 = sshll.u32 %s188_s22, 3 }
  0x16   : > { %s195_s5 = scalar_lea.vmem %s1366_s0, %s1023_s28  ;;  %v294_v42 = vperm.slane %v971_v41, 0  ;;  %v295_v43 = vperm.slane %v971_v41, 1  ;;  %v972_v49 = vld [vmem:[%s1367_s1 + $0x4] sm:$0xf]  ;;  %v978_v51 = vld [vmem:[%s1367_s1 + $0x8] sm:$0xf] }
  0x17   : > { %v196_v0 = vld [vmem:[%s195_s5] sm:$0xff]  ;;  %vm366_vm0 = vcmp.lt.s32.totalorder %v1224_v22, 15  ;;  %vm210_vm1 = vcmp.lt.s32.totalorder %v1224_v22, 17  ;;  %vm288_vm4 = vcmp.lt.s32.totalorder %v1224_v22, 16  ;;  %vm444_vm5 = vcmp.lt.s32.totalorder %v1224_v22, 1  ;;  %s1024_s27 = sshll.u32 %s1190_s19, 3 }
  0x18   : > { %199 = vst [vmem:[#allocation1] ss:$2 sm:$0xff] %v196_v0  ;;  %v983_v50 = vld [vmem:[%s1368_s2 + $0x6] sm:$0x3]  ;;  %v984_v60 = vld [vmem:[%s1367_s1 + $0xc] sm:$0xf]  ;;  %s896_s30 = scalar_lea.hbm %s1370_s4, %s1024_s27 }
  0x19   : > { %v450_v52 = vperm.slane %v983_v50, 0  ;;  %v451_v53 = vperm.slane %v983_v50, 1  ;;  %v989_v61 = vld [vmem:[%s1367_s1 + $0x10] sm:$0xf]  ;;  %v994_v62 = vld [vmem:[%s1368_s2 + $0xa] sm:$0x3] }
  0x1a   : > { %vm580_vm6 = vcmp.lt.s32.totalorder %v1224_v22, 127  ;;  %vm658_vm7 = vcmp.lt.s32.totalorder %v1224_v22, 113  ;;  %vm736_vm8 = vcmp.lt.s32.totalorder %v1224_v22, 112  ;;  %vm814_vm9 = vcmp.lt.s32.totalorder %v1224_v22, 111  ;;  %s190_s5 = scalar_lea.vmem [#allocation2], %s964_s23  ;;  %s900_s19 = sshll.u32 %s896_s30, 4  ;;  %s901_s19 = int_to_ptr.hbm [resolvable:$true] %s900_s19 }
  0x1f   : > { %v200_v1 = vld.sshfl [vmem:[#allocation1] sm:$0xff pattern:$0x75316420]  ;;  %v201_v2 = vld.sshfl [vmem:[#allocation1 + $0x8] sm:$0xff pattern:$0x75316420] }
  0x20   : > { %204 = vrot.lane.b32.xlu0 %v200_v1, %s1136_s6  ;;  %279 = vst [vmem:[#allocation1] ss:$2 sm:$0xff] %v196_v0  ;;  %v587_v1 = vperm.slane %v994_v62, 1 }
  0x27   : > { %v280_v3 = vld.sshfl [vmem:[#allocation1] sm:$0xff pattern:$0x75316420]  ;;  %v281_v4 = vld.sshfl [vmem:[#allocation1 + $0x8] sm:$0xff pattern:$0x75316420] }
  0x28   : > { %284 = vrot.lane.b32.xlu1 %v280_v3, %s1137_s7  ;;  %206 = vrot.lane.b32.xlu0 %v201_v2, %s1136_s6  ;;  %357 = vst [vmem:[#allocation1] ss:$2 sm:$0xff] %v196_v0  ;;  %s898_s6 = sshll.u32 %s190_s5, 4  ;;  %s899_s6 = int_to_ptr.vmem [resolvable:$true] %s898_s6 }
  0x2f   : > { %v358_v5 = vld.sshfl [vmem:[#allocation1] sm:$0xff pattern:$0x75316420]  ;;  %v359_v6 = vld.sshfl [vmem:[#allocation1 + $0x8] sm:$0xff pattern:$0x75316420] }
  0x30   : > { %286 = vrot.lane.b32.xlu1 %v281_v4, %s1137_s7  ;;  %435 = vst [vmem:[#allocation1] ss:$2 sm:$0xff] %v196_v0  ;;  %362 = vrot.lane.b32.xlu2 %v358_v5, %s1138_s8  ;;  %s885_s7 = scalar_lea.sflag [#allocation3], %s188_s22 }
  0x37   : > { %v437_v7 = vld.sshfl [vmem:[#allocation1 + $0x8] sm:$0xff pattern:$0x75316420]  ;;  %v436_v8 = vld.sshfl [vmem:[#allocation1] sm:$0xff pattern:$0x75316420] }
  0x38   : > { %442 = vrot.lane.b32.xlu1 %v437_v7, %s1139_s9  ;;  %440 = vrot.lane.b32.xlu0 %v436_v8, %s1139_s9  ;;  %515 = vst [vmem:[#allocation1] ss:$2 sm:$0xff] %v196_v0  ;;  %v995_v7 = vld [vmem:[%s1367_s1 + $0x14] sm:$0xf]  ;;  %v1000_v8 = vld [vmem:[%s1368_s2 + $0xc] sm:$0x3] }
  0x39   : > { %364 = vrot.lane.b32.xlu2 %v359_v6, %s1138_s8  ;;  %s1086_s8 = sshra.s32 %s901_s19, 4  ;;  %s1087_s8 = int_to_ptr.hbm [resolvable:$true] %s1086_s8 }
  0x3a   : > { %s1088_s9 = scalar_lea.hbm %s1087_s8, 8  ;;  %p1093_p0 = scmp.lt.s32.totalorder %s1087_s8, %s1370_s4 }
  0x3b   : > { %p1089_p11 = scmp.ne.s32.totalorder %s1087_s8, %s1088_s9 }
  0x3d   : > { %p1090_p12 = pnand %p1089_p11, %p1207_p5 }
  0x3f   : > { %v1222_v9 = vld.sshfl [vmem:[#allocation1] sm:$0xff pattern:$0x75316420]  ;;  %v517_v10 = vld.sshfl [vmem:[#allocation1 + $0x8] sm:$0xff pattern:$0x75316420]  ;;  %p1091_p13 = pneg %p1090_p12 }
  0x40   : > { %571 = vst [vmem:[#allocation1] ss:$2 sm:$0xff] %v196_v0 }
  0x47   : > { %v573_v11 = vld.sshfl [vmem:[#allocation1 + $0x8] sm:$0xff pattern:$0x75316420]  ;;  %v572_v12 = vld.sshfl [vmem:[#allocation1] sm:$0xff pattern:$0x75316420] }
  0x48   : > { %578 = vrot.lane.b32.xlu0 %v573_v11, %s1140_s10  ;;  %649 = vst [vmem:[#allocation1] ss:$2 sm:$0xff] %v196_v0  ;;  %576 = vrot.lane.b32.xlu2 %v572_v12, %s1140_s10  ;;  %v665_v11 = vperm.slane %v1000_v8, 1 }
  0x4f   : > { %v650_v13 = vld.sshfl [vmem:[#allocation1] sm:$0xff pattern:$0x75316420]  ;;  %v651_v14 = vld.sshfl [vmem:[#allocation1 + $0x8] sm:$0xff pattern:$0x75316420] }
  0x50   : > { %654 = vrot.lane.b32.xlu1 %v650_v13, %s1141_s11  ;;  %727 = vst [vmem:[#allocation1] ss:$2 sm:$0xff] %v196_v0  ;;  %656 = vrot.lane.b32.xlu2 %v651_v14, %s1141_s11 }
  0x57   : > { %v729_v15 = vld.sshfl [vmem:[#allocation1 + $0x8] sm:$0xff pattern:$0x75316420]  ;;  %v728_v16 = vld.sshfl [vmem:[#allocation1] sm:$0xff pattern:$0x75316420] }
  0x58   : > { %734 = vrot.lane.b32.xlu1 %v729_v15, %s1142_s12  ;;  %732 = vrot.lane.b32.xlu0 %v728_v16, %s1142_s12  ;;  %805 = vst [vmem:[#allocation1] ss:$2 sm:$0xff] %v196_v0  ;;  %v586_v0 = vperm.slane %v994_v62, 0  ;;  %s1092_s12 = scalar_lea.hbm %s1370_s4, 16 }
  0x59   : > { %p1094_p1 = scmp.lt.s32.totalorder %s1092_s12, %s1088_s9 }
  0x5b   : > { %p1095_p2 = por %p1094_p1, %p1093_p0 }
  0x5d   : > { %p1096_p3 = pnand %p1095_p2, %p1091_p13 }
  0x5f   : > { %v807_v17 = vld.sshfl [vmem:[#allocation1 + $0x8] sm:$0xff pattern:$0x75316420]  ;;  %v806_v18 = vld.sshfl [vmem:[#allocation1] sm:$0xff pattern:$0x75316420] }
  0x60   : > { %812 = vrot.lane.b32.xlu0 %v807_v17, %s1143_s13  ;;  %810 = vrot.lane.b32.xlu2 %v806_v18, %s1143_s13  ;;  %v1001_v17 = vld [vmem:[%s1367_s1 + $0x18] sm:$0xf]  ;;  %v1006_v18 = vld [vmem:[%s1368_s2 + $0xe] sm:$0x3] }
  0x61   : > { %v743_v20 = vperm.slane %v1006_v18, 1 }
  0x8a   : > { %v363_v19 = vpop.permute.xlu2 %362 }
  0x92   : > { %v205_v21 = vpop.permute.xlu0 %204 }
  0x93   : > { %v365_v25 = vpop.permute.xlu2 %364 }
  0x94   : > { %v367_v30 = vsel %vm366_vm0, %v363_v19, %v365_v25  ;;  %v368_v31 = vsel %vm366_vm0, %v365_v25, %v363_v19  ;;  %v742_v19 = vperm.slane %v1006_v18, 0 }
  0x95   : > { %v376_v39 = vmul.f32 %v372_v28, %v368_v31  ;;  %v377_v40 = vmul.f32 %v373_v29, %v367_v30  ;;  %v1007_v28 = vld [vmem:[%s1367_s1 + $0x1c] sm:$0xf]  ;;  %v1012_v29 = vld [vmem:[%s1368_s2 + $0x10] sm:$0x3] }
  0x96   : > { %v820_v30 = vperm.slane %v1012_v29, 0  ;;  %v821_v31 = vperm.slane %v1012_v29, 1 }
  0x9a   : > { %v285_v32 = vpop.permute.xlu1 %284  ;;  %v207_v33 = vpop.permute.xlu0 %206 }
  0x9b   : > { %v211_v34 = vsel %vm210_vm1, %v205_v21, %v207_v33  ;;  %v212_v35 = vsel %vm210_vm1, %v207_v33, %v205_v21 }
  0x9c   : > { %v219_v36 = vmul.f32 %v215_v26, %v212_v35  ;;  %v220_v37 = vmul.f32 %v216_v27, %v211_v34 }
  0x9e   : > { %967 = vmatpush.msk.msra.mxu0 %vm226_vm2, %v219_v36  ;;  %969 = vmatpush.msk.msra.mxu1 %vm226_vm2, %v220_v37 }
  0x9f   : > { %970 = vmatmul.msk.f32.vlgmr.msra.gmra.mxu1 %vm222_vm3, %v221_v38  ;;  %968 = vmatmul.msk.f32.vlgmr.msra.gmra.mxu0 %vm222_vm3, %v221_v38  ;;  %v1013_v38 = vld [vmem:[%s1367_s1 + $0x20] sm:$0xf] }
  0xa0   : > { %979 = vmatpush.msk.msrb.mxu0 %vm226_vm2, %v376_v39  ;;  %981 = vmatpush.msk.msrb.mxu1 %vm226_vm2, %v377_v40 }
  0xa2   : > { %992 = vmatpush.msk.msra.mxu1 %vm226_vm2, %v517_v10  ;;  %990 = vmatpush.msk.msra.mxu0 %vm226_vm2, %v1222_v9  ;;  %v287_v44 = vpop.permute.xlu1 %286  ;;  %v577_v63 = vpop.permute.xlu2 %576  ;;  %v664_v10 = vperm.slane %v1000_v8, 0 }
  0xa3   : > { %v289_v45 = vsel %vm288_vm4, %v285_v32, %v287_v44  ;;  %v290_v46 = vsel %vm288_vm4, %v287_v44, %v285_v32 }
  0xa4   : > { %v298_v47 = vmul.f32 %v294_v42, %v290_v46  ;;  %v299_v48 = vmul.f32 %v295_v43, %v289_v45  ;;  %v197_v45 = vld [vmem:[%s1369_s3] sm:$0xff] }
  0xa6   : > { %973 = vmatpush.msk.msra.mxu2 %vm226_vm2, %v298_v47  ;;  %975 = vmatpush.msk.msra.mxu3 %vm226_vm2, %v299_v48 }
  0xa7   : > { %976 = vmatmul.msk.f32.vlgmr.msra.gmra.mxu3 %vm222_vm3, %v972_v49  ;;  %974 = vmatmul.msk.f32.vlgmr.msra.gmra.mxu2 %vm222_vm3, %v972_v49 }
  0xa8   : > { %982 = vmatmul.msk.f32.vlgmr.msrb.gmra.mxu1 %vm222_vm3, %v978_v51  ;;  %980 = vmatmul.msk.f32.vlgmr.msrb.gmra.mxu0 %vm222_vm3, %v978_v51 }
  0xaa   : > { %v443_v54 = vpop.permute.xlu1 %442  ;;  %v441_v55 = vpop.permute.xlu0 %440 }
  0xab   : > { %v445_v56 = vsel %vm444_vm5, %v441_v55, %v443_v54  ;;  %v446_v57 = vsel %vm444_vm5, %v443_v54, %v441_v55  ;;  %v657_v9 = vpop.permute.xlu2 %656 }
  0xac   : > { %v454_v58 = vmul.f32 %v450_v52, %v446_v57  ;;  %v455_v59 = vmul.f32 %v451_v53, %v445_v56 }
  0xae   : > { %987 = vmatpush.msk.msrb.mxu3 %vm226_vm2, %v455_v59  ;;  %985 = vmatpush.msk.msrb.mxu2 %vm226_vm2, %v454_v58 }
  0xaf   : > { %988 = vmatmul.msk.f32.vlgmr.msrb.gmra.mxu3 %vm222_vm3, %v984_v60  ;;  %986 = vmatmul.msk.f32.vlgmr.msrb.gmra.mxu2 %vm222_vm3, %v984_v60 }
  0xb0   : > { %993 = vmatmul.msk.f32.vlgmr.msra.gmra.mxu1 %vm222_vm3, %v989_v61  ;;  %991 = vmatmul.msk.f32.vlgmr.msra.gmra.mxu0 %vm222_vm3, %v989_v61 }
  0xba   : > { %v579_v2 = vpop.permute.xlu0 %578  ;;  %v811_v32 = vpop.permute.xlu2 %810 }
  0xbb   : > { %v581_v3 = vsel %vm580_vm6, %v577_v63, %v579_v2  ;;  %v582_v4 = vsel %vm580_vm6, %v579_v2, %v577_v63 }
  0xbc   : > { %v590_v5 = vmul.f32 %v586_v0, %v581_v3  ;;  %v591_v6 = vmul.f32 %v587_v1, %v582_v4 }
  0xbe   : > { %998 = vmatpush.msk.msra.mxu3 %vm226_vm2, %v591_v6  ;;  %996 = vmatpush.msk.msra.mxu2 %vm226_vm2, %v590_v5 }
  0xbf   : > { %999 = vmatmul.msk.f32.vlgmr.msra.gmra.mxu3 %vm222_vm3, %v995_v7  ;;  %997 = vmatmul.msk.f32.vlgmr.msra.gmra.mxu2 %vm222_vm3, %v995_v7 }
  0xc2   : > { %v655_v12 = vpop.permute.xlu1 %654 }
  0xc3   : > { %v659_v13 = vsel %vm658_vm7, %v655_v12, %v657_v9  ;;  %v660_v14 = vsel %vm658_vm7, %v657_v9, %v655_v12 }
  0xc4   : > { %v668_v15 = vmul.f32 %v664_v10, %v659_v13  ;;  %v669_v16 = vmul.f32 %v665_v11, %v660_v14 }
  0xc6   : > { %1002 = vmatpush.msk.msrb.mxu0 %vm226_vm2, %v668_v15  ;;  %1004 = vmatpush.msk.msrb.mxu1 %vm226_vm2, %v669_v16 }
  0xc7   : > { %1005 = vmatmul.msk.f32.vlgmr.msrb.gmra.mxu1 %vm222_vm3, %v1001_v17  ;;  %1003 = vmatmul.msk.f32.vlgmr.msrb.gmra.mxu0 %vm222_vm3, %v1001_v17 }
  0xca   : > { %v735_v21 = vpop.permute.xlu1 %734  ;;  %v733_v23 = vpop.permute.xlu0 %732 }
  0xcb   : > { %v737_v24 = vsel %vm736_vm8, %v733_v23, %v735_v21  ;;  %v738_v25 = vsel %vm736_vm8, %v735_v21, %v733_v23 }
  0xcc   : > { %v746_v26 = vmul.f32 %v742_v19, %v737_v24  ;;  %v747_v27 = vmul.f32 %v743_v20, %v738_v25 }
  0xce   : > { %1008 = vmatpush.msk.msrb.mxu2 %vm226_vm2, %v746_v26  ;;  %1010 = vmatpush.msk.msrb.mxu3 %vm226_vm2, %v747_v27 }
  0xcf   : > { %1011 = vmatmul.msk.f32.vlgmr.msrb.gmra.mxu3 %vm222_vm3, %v1007_v28  ;;  %1009 = vmatmul.msk.f32.vlgmr.msrb.gmra.mxu2 %vm222_vm3, %v1007_v28 }
  0xd2   : > { %v813_v33 = vpop.permute.xlu0 %812 }
  0xd3   : > { %v815_v34 = vsel %vm814_vm9, %v811_v32, %v813_v33  ;;  %v816_v35 = vsel %vm814_vm9, %v813_v33, %v811_v32 }
  0xd4   : > { %v824_v36 = vmul.f32 %v820_v30, %v815_v34  ;;  %v825_v37 = vmul.f32 %v821_v31, %v816_v35 }
  0xd6   : > { %1014 = vmatpush.msk.msra.mxu0 %vm226_vm2, %v824_v36  ;;  %1016 = vmatpush.msk.msra.mxu1 %vm226_vm2, %v825_v37 }
  0xd7   : > { %1017 = vmatmul.msk.f32.vlgmr.msra.gmra.mxu1 %vm222_vm3, %v1013_v38  ;;  %1015 = vmatmul.msk.f32.vlgmr.msra.gmra.mxu0 %vm222_vm3, %v1013_v38 }
 0x11c   : > { %v270_v22 = vpop.f32.mrf.mxu1  ;;  %v250_v39 = vpop.f32.mrf.mxu0 }
 0x11d   : > { %v275_v43 = vrot.slane %v270_v22, 4 }
 0x11f   : > { %v276_v46 = vsel %vm226_vm2, %v250_v39, %v275_v43 }
 0x120   : > { %v278_v49 = vadd.f32 %v276_v46, %v197_v45 }
 0x125   : > { %v426_v42 = vpop.f32.mrf.mxu1  ;;  %v406_v44 = vpop.f32.mrf.mxu0 }
 0x126   : > { %v431_v51 = vrot.slane %v426_v42, 4 }
 0x128   : > { %v432_v56 = vsel %vm226_vm2, %v406_v44, %v431_v51 }
 0x12a   : > { %v348_v40 = vpop.f32.mrf.mxu3  ;;  %v328_v41 = vpop.f32.mrf.mxu2 }
 0x12b   : > { %v353_v47 = vrot.slane %v348_v40, 4 }
 0x12d   : > { %v354_v50 = vsel %vm226_vm2, %v328_v41, %v353_v47  ;;  %v562_v53 = vpop.f32.mrf.mxu1  ;;  %v542_v55 = vpop.f32.mrf.mxu0 }
 0x12e   : > { %v356_v54 = vadd.f32 %v354_v50, %v278_v49  ;;  %v567_v61 = vrot.slane %v562_v53, 4 }
 0x130   : > { %v434_v58 = vadd.f32 %v432_v56, %v356_v54  ;;  %v568_v2 = vsel %vm226_vm2, %v542_v55, %v567_v61 }
 0x132   : > { %v504_v48 = vpop.f32.mrf.mxu3  ;;  %v484_v52 = vpop.f32.mrf.mxu2 }
 0x133   : > { %v509_v57 = vrot.slane %v504_v48, 4 }
 0x135   : > { %v510_v60 = vsel %vm226_vm2, %v484_v52, %v509_v57 }
 0x136   : > { %v512_v63 = vadd.f32 %v510_v60, %v434_v58 }
 0x138   : > { %v570_v6 = vadd.f32 %v568_v2, %v512_v63 }
 0x142   : > { %v640_v59 = vpop.f32.mrf.mxu3  ;;  %v620_v0 = vpop.f32.mrf.mxu2 }
 0x143   : > { %v645_v62 = vrot.slane %v640_v59, 4 }
 0x144   : > { %v718_v1 = vpop.f32.mrf.mxu1  ;;  %v698_v3 = vpop.f32.mrf.mxu0 }
 0x145   : > { %v646_v4 = vsel %vm226_vm2, %v620_v0, %v645_v62  ;;  %v723_v5 = vrot.slane %v718_v1, 4 }
 0x146   : > { %v648_v7 = vadd.f32 %v646_v4, %v570_v6 }
 0x147   : > { %v724_v8 = vsel %vm226_vm2, %v698_v3, %v723_v5 }
 0x148   : > { %v726_v12 = vadd.f32 %v724_v8, %v648_v7 }
 0x152   : > { %v796_v9 = vpop.f32.mrf.mxu3  ;;  %v776_v10 = vpop.f32.mrf.mxu2 }
 0x153   : > { %v801_v11 = vrot.slane %v796_v9, 4 }
 0x154   : > { %v874_v13 = vpop.f32.mrf.mxu1  ;;  %v854_v14 = vpop.f32.mrf.mxu0 }
 0x155   : > { %v802_v15 = vsel %vm226_vm2, %v776_v10, %v801_v11  ;;  %v879_v16 = vrot.slane %v874_v13, 4 }
 0x156   : > { %v804_v17 = vadd.f32 %v802_v15, %v726_v12 }
 0x157   : > { %v880_v18 = vsel %vm226_vm2, %v854_v14, %v879_v16 }
 0x158   : > { %v882_v19 = vadd.f32 %v880_v18, %v804_v17 }
 0x15a   : > { %883 = vst [vmem:[%s190_s5] sm:$0xff] %v882_v19 }
 0x15b   : > { %1099 = shalt.err (!%p1096_p3)
}
 0x15c   : > { %1025 = dma.vmem_to_hbm [thread:$0]  (%p1207_p5), %s899_s6, 128, %s901_s19, %s885_s7  }
 0x15d PF: > { %p1031_p4 = scmp.ge.s32.totalorder %s1134_s18, 2  ;;  %s912_s20 = sand.u32 1, %s1122_s15  }
 0x15e   : > { %s913_s22 = scalar_lea.sflag [#allocation3], %s912_s20 }
 0x15f   : > { %p1028_p7 = pnand %p1031_p4, %p1211_p6 }
 0x161   : > { %p1029_p8 = pneg %p1028_p7 }
 0x163   : > { %1117 = dma.done.wait (%p1029_p8), %s913_s22, 128  }
 0x164   : > { %1119 = vsyncadd (%p1029_p8), %s913_s22, 4294967168  ;;  %p14_p9 = scmp.ge.s32.totalorder %s1194_s21, 4   ;;  %s1373_s15 = smov %s1126_s16 }
 0x165   : > { %s1374_s16 = smov %s1130_s17  ;;  %s1375_s17 = smov %s1205_s24 }
 0x166   : > { %s1376_s18 = smov %s1194_s21  ;;  %16 = sbr.rel (!%p14_p9) target bundleno = 3 (0x3), region = 86 }
 0x16b   :  { %919 = vsyncpa [#allocation3], 1 }
 0x16c   :  { %921 = vsyncpa [#allocation3 + $0x1], 1 }

</bundles_post_ra>
